<compile_context>
chip_gen: v6e
topology: v6e:2x2x1
jax: 0.10.0
libtpu: 0.0.40
codegen_flags: <defaults>
</compile_context>

<pallas_src>
import jax
import jax.numpy as jnp
from jax.experimental import pallas as pl
from jax.experimental.pallas import tpu as pltpu

LANE = 128      # TPU lane width — pad the tiny n_actions output up to this
SUBLANE = 8     # f32 sublane count — keep batch tiles a multiple of this
TM_MAX = 256    # max batch-tile rows per grid step (one full MXU pass)


def dqn_kernel(s_ref, d_ref, w1s_ref, w1d_ref, b1_ref,
               w2_ref, b2_ref, w3_ref, b3_ref, o_ref):
    """One batch tile: three back-to-back MXU matmuls, f32 accumulation."""
    wdt = w2_ref.dtype  # weight dtype (f32 or bf16); activations stay f32
    # fc1 with the concat fused: state-part + dice-part of w1, then bias+ReLU.
    h = (jnp.dot(s_ref[...].astype(wdt), w1s_ref[...],
                 preferred_element_type=jnp.float32)
         + jnp.dot(d_ref[...].astype(wdt), w1d_ref[...],
                   preferred_element_type=jnp.float32)
         + b1_ref[...])
    h = jnp.maximum(h, 0.0)
    # fc2
    h = jnp.dot(h.astype(wdt), w2_ref[...],
                preferred_element_type=jnp.float32) + b2_ref[...]
    h = jnp.maximum(h, 0.0)
    # fc3 (output lanes padded to a multiple of 128 -> lane-dense store)
    o_ref[...] = jnp.dot(h.astype(wdt), w3_ref[...],
                         preferred_element_type=jnp.float32) + b3_ref[...]


def dqn_forward(state, dice_roll, kernel_params, n_actions):
    """state: (B, 28) f32, dice_roll: (B, 2) f32 -> (B, n_actions) f32."""
    w1s, w1d, b1, w2, b2, w3p, b3p = kernel_params
    state = state.astype(jnp.float32)
    dice_roll = dice_roll.astype(jnp.float32)
    B, S = state.shape
    D = dice_roll.shape[1]
    n_pad = w3p.shape[1]

    # Batch tiling: one grid step per tm rows; keep tm a multiple of 8 sublanes.
    if B <= TM_MAX:
        tm = max(SUBLANE, ((B + SUBLANE - 1) // SUBLANE) * SUBLANE)
        b_pad = tm
    else:
        tm = TM_MAX
        b_pad = pl.cdiv(B, tm) * tm
    if b_pad != B:
        pad = b_pad - B
        state = jnp.pad(state, ((0, pad), (0, 0)))
        dice_roll = jnp.pad(dice_roll, ((0, pad), (0, 0)))
    grid = (b_pad // tm,)

    def row_spec(cols):           # streamed per batch-tile
        return pl.BlockSpec((tm, cols), lambda i: (i, 0))

    def resident_spec(shape):     # VMEM-resident across all grid steps
        return pl.BlockSpec(shape, lambda i: (0, 0))

    out = pl.pallas_call(
        dqn_kernel,
        out_shape=jax.ShapeDtypeStruct((b_pad, n_pad), jnp.float32),
        grid=grid,
        in_specs=[
            row_spec(S), row_spec(D),
            resident_spec(w1s.shape), resident_spec(w1d.shape),
            resident_spec(b1.shape),
            resident_spec(w2.shape), resident_spec(b2.shape),
            resident_spec(w3p.shape), resident_spec(b3p.shape),
        ],
        out_specs=row_spec(n_pad),
        compiler_params=pltpu.CompilerParams(
            dimension_semantics=("parallel",)),
    )(state, dice_roll, w1s, w1d, b1, w2, b2, w3p, b3p)

    return out[:B, :n_actions]


def init_params(key, input_size=28, fc1_dims=256, fc2_dims=256, n_actions=4):
    """nn.Linear-style init (U[-1/sqrt(fan_in), +]); logical (in, out) layout."""
    in_size = input_size + 2  # board + 2 dice values
    dims = [(in_size, fc1_dims), (fc1_dims, fc2_dims), (fc2_dims, n_actions)]
    params = []
    for fan_in, fan_out in dims:
        key, kw, kb = jax.random.split(key, 3)
        bound = 1.0 / (fan_in ** 0.5)
        w = jax.random.uniform(kw, (fan_in, fan_out), jnp.float32, -bound, bound)
        b = jax.random.uniform(kb, (1, fan_out), jnp.float32, -bound, bound)
        params += [w, b]
    return tuple(params)  # (w1, b1, w2, b2, w3, b3)


def prepare_params(params, n_dice=2, weight_dtype=jnp.float32):
    """One-time kernel layout: split w1 (fuses the concat), pad fc3 to 128 lanes,
    optionally cast weights (only) to bf16 for the v6e/v7x MXU path."""
    w1, b1, w2, b2, w3, b3 = params
    in1 = w1.shape[0]
    w1s, w1d = w1[: in1 - n_dice], w1[in1 - n_dice:]
    n_actions = w3.shape[1]
    n_pad = ((n_actions + LANE - 1) // LANE) * LANE
    w3p = jnp.zeros((w3.shape[0], n_pad), jnp.float32).at[:, :n_actions].set(w3)
    b3p = jnp.zeros((1, n_pad), jnp.float32).at[:, :n_actions].set(b3)
    cast = lambda w: w.astype(weight_dtype)
    # Biases stay f32 so elementwise adds / ReLU never touch bf16 on the VPU.
    return (cast(w1s), cast(w1d), b1.astype(jnp.float32),
            cast(w2), b2.astype(jnp.float32),
            cast(w3p), b3p.astype(jnp.float32))


def reference_forward(state, dice_roll, params):
    """Pure-JAX f32 reference of the PyTorch forward."""
    x = jnp.concatenate([state, dice_roll], axis=1)
    w1, b1, w2, b2, w3, b3 = params
    x = jnp.maximum(x @ w1 + b1, 0.0)
    x = jnp.maximum(x @ w2 + b2, 0.0)
    return x @ w3 + b3


if __name__ == "__main__":
    key = jax.random.PRNGKey(0)
    kp, ks, kd, ks2, kd2 = jax.random.split(key, 5)

    board_len = 28
    n_actions = 4
    params = init_params(kp, input_size=board_len, n_actions=n_actions)

    # --- small batch (the Agent.observation path), f32 weights ---
    B = 2
    state = jax.random.normal(ks, (B, board_len), jnp.float32)
    dice = jnp.floor(jax.random.uniform(kd, (B, 2), jnp.float32, 1.0, 7.0))

    kparams_f32 = prepare_params(params, weight_dtype=jnp.float32)
    out = jax.block_until_ready(dqn_forward(state, dice, kparams_f32, n_actions))
    ref = reference_forward(state, dice, params)
    assert out.shape == (B, n_actions)
    assert jnp.allclose(out, ref, atol=1e-4, rtol=1e-4)

    # --- same inputs, bf16 weights (v6e/v7x MXU path), f32 activations ---
    kparams_bf16 = prepare_params(params, weight_dtype=jnp.bfloat16)
    out_bf16 = jax.block_until_ready(
        dqn_forward(state, dice, kparams_bf16, n_actions))
    assert jnp.allclose(out_bf16, ref, atol=5e-2, rtol=5e-2)

    # --- batched path (replay-buffer-style): exercises grid > 1 + batch padding ---
    B2 = 384  # > TM_MAX and not a multiple of it
    state2 = jax.random.normal(ks2, (B2, board_len), jnp.float32)
    dice2 = jnp.floor(jax.random.uniform(kd2, (B2, 2), jnp.float32, 1.0, 7.0))
    out2 = jax.block_until_ready(
        dqn_forward(state2, dice2, kparams_f32, n_actions))
    ref2 = reference_forward(state2, dice2, params)
    assert out2.shape == (B2, n_actions)
    assert jnp.allclose(out2, ref2, atol=1e-4, rtol=1e-4)

    # --- mid batch (learn() path, batch_size=64) ---
    out3 = jax.block_until_ready(
        dqn_forward(state2[:64], dice2[:64], kparams_f32, n_actions))
    assert jnp.allclose(out3, ref2[:64], atol=1e-4, rtol=1e-4)

    print("KERNEL_OK")
</pallas_src>

<mosaic_0001>
module attributes {stable_mosaic.version = 11 : i64} {
  func.func @dqn_kernel(%arg0: i32, %arg1: memref<8x28xf32, #tpu.memory_space<vmem>>, %arg2: memref<8x2xf32, #tpu.memory_space<vmem>>, %arg3: memref<28x256xf32, #tpu.memory_space<vmem>>, %arg4: memref<2x256xf32, #tpu.memory_space<vmem>>, %arg5: memref<1x256xf32, #tpu.memory_space<vmem>>, %arg6: memref<256x256xf32, #tpu.memory_space<vmem>>, %arg7: memref<1x256xf32, #tpu.memory_space<vmem>>, %arg8: memref<256x128xf32, #tpu.memory_space<vmem>>, %arg9: memref<1x128xf32, #tpu.memory_space<vmem>>, %arg10: memref<8x128xf32, #tpu.memory_space<vmem>>) attributes {dimension_semantics = [#tpu.dimension_semantics<parallel>], iteration_bounds = array<i64: 1>, scalar_prefetch = 0 : i64, scratch_operands = 0 : i64, tpu.core_type = #tpu.core_type<tc>, window_params = [{transform_indices = @transform_0, window_bounds = array<i64: 8, 28>}, {transform_indices = @transform_1, window_bounds = array<i64: 8, 2>}, {pipeline_mode = #tpu.pipeline_mode<synchronous>, transform_indices = @transform_2, window_bounds = array<i64: 28, 256>}, {pipeline_mode = #tpu.pipeline_mode<synchronous>, transform_indices = @transform_3, window_bounds = array<i64: 2, 256>}, {pipeline_mode = #tpu.pipeline_mode<synchronous>, transform_indices = @transform_4, window_bounds = array<i64: 1, 256>}, {pipeline_mode = #tpu.pipeline_mode<synchronous>, transform_indices = @transform_5, window_bounds = array<i64: 256, 256>}, {pipeline_mode = #tpu.pipeline_mode<synchronous>, transform_indices = @transform_6, window_bounds = array<i64: 1, 256>}, {pipeline_mode = #tpu.pipeline_mode<synchronous>, transform_indices = @transform_7, window_bounds = array<i64: 256, 128>}, {pipeline_mode = #tpu.pipeline_mode<synchronous>, transform_indices = @transform_8, window_bounds = array<i64: 1, 128>}, {transform_indices = @transform_9, window_bounds = array<i64: 8, 128>}]} {
    %c0 = arith.constant 0 : index
    %c0_0 = arith.constant 0 : index
    %0 = vector.load %arg1[%c0, %c0_0] : memref<8x28xf32, #tpu.memory_space<vmem>>, vector<8x28xf32>
    %c0_1 = arith.constant 0 : index
    %c0_2 = arith.constant 0 : index
    %1 = vector.load %arg3[%c0_1, %c0_2] : memref<28x256xf32, #tpu.memory_space<vmem>>, vector<28x256xf32>
    %cst = arith.constant dense<0.000000e+00> : vector<8x256xf32>
    %2 = tpu.matmul %0, %1, %cst {dimension_numbers = #tpu.dot_dimension_numbers<[1], [0], [0], [1], [0, 0, 1, 1], [], []>} : vector<8x28xf32>, vector<28x256xf32>, vector<8x256xf32> -> vector<8x256xf32>
    %c0_3 = arith.constant 0 : index
    %c0_4 = arith.constant 0 : index
    %3 = vector.load %arg2[%c0_3, %c0_4] : memref<8x2xf32, #tpu.memory_space<vmem>>, vector<8x2xf32>
    %c0_5 = arith.constant 0 : index
    %c0_6 = arith.constant 0 : index
    %4 = vector.load %arg4[%c0_5, %c0_6] : memref<2x256xf32, #tpu.memory_space<vmem>>, vector<2x256xf32>
    %cst_7 = arith.constant dense<0.000000e+00> : vector<8x256xf32>
    %5 = tpu.matmul %3, %4, %cst_7 {dimension_numbers = #tpu.dot_dimension_numbers<[1], [0], [0], [1], [0, 0, 1, 1], [], []>} : vector<8x2xf32>, vector<2x256xf32>, vector<8x256xf32> -> vector<8x256xf32>
    %6 = arith.addf %2, %5 : vector<8x256xf32>
    %c0_8 = arith.constant 0 : index
    %c0_9 = arith.constant 0 : index
    %7 = vector.load %arg5[%c0_8, %c0_9] : memref<1x256xf32, #tpu.memory_space<vmem>>, vector<1x256xf32>
    %8 = vector.broadcast %7 : vector<1x256xf32> to vector<8x256xf32>
    %9 = arith.addf %6, %8 : vector<8x256xf32>
    %cst_10 = arith.constant 0.000000e+00 : f32
    %10 = vector.broadcast %cst_10 : f32 to vector<8x256xf32>
    %11 = arith.maximumf %9, %10 : vector<8x256xf32>
    %c0_11 = arith.constant 0 : index
    %c0_12 = arith.constant 0 : index
    %12 = vector.load %arg6[%c0_11, %c0_12] : memref<256x256xf32, #tpu.memory_space<vmem>>, vector<256x256xf32>
    %cst_13 = arith.constant dense<0.000000e+00> : vector<8x256xf32>
    %13 = tpu.matmul %11, %12, %cst_13 {dimension_numbers = #tpu.dot_dimension_numbers<[1], [0], [0], [1], [0, 0, 1, 1], [], []>} : vector<8x256xf32>, vector<256x256xf32>, vector<8x256xf32> -> vector<8x256xf32>
    %c0_14 = arith.constant 0 : index
    %c0_15 = arith.constant 0 : index
    %14 = vector.load %arg7[%c0_14, %c0_15] : memref<1x256xf32, #tpu.memory_space<vmem>>, vector<1x256xf32>
    %15 = vector.broadcast %14 : vector<1x256xf32> to vector<8x256xf32>
    %16 = arith.addf %13, %15 : vector<8x256xf32>
    %cst_16 = arith.constant 0.000000e+00 : f32
    %17 = vector.broadcast %cst_16 : f32 to vector<8x256xf32>
    %18 = arith.maximumf %16, %17 : vector<8x256xf32>
    %c0_17 = arith.constant 0 : index
    %c0_18 = arith.constant 0 : index
    %19 = vector.load %arg8[%c0_17, %c0_18] : memref<256x128xf32, #tpu.memory_space<vmem>>, vector<256x128xf32>
    %cst_19 = arith.constant dense<0.000000e+00> : vector<8x128xf32>
    %20 = tpu.matmul %18, %19, %cst_19 {dimension_numbers = #tpu.dot_dimension_numbers<[1], [0], [0], [1], [0, 0, 1, 1], [], []>} : vector<8x256xf32>, vector<256x128xf32>, vector<8x128xf32> -> vector<8x128xf32>
    %c0_20 = arith.constant 0 : index
    %c0_21 = arith.constant 0 : index
    %21 = vector.load %arg9[%c0_20, %c0_21] : memref<1x128xf32, #tpu.memory_space<vmem>>, vector<1x128xf32>
    %22 = vector.broadcast %21 : vector<1x128xf32> to vector<8x128xf32>
    %23 = arith.addf %20, %22 : vector<8x128xf32>
    %c0_22 = arith.constant 0 : index
    %c0_23 = arith.constant 0 : index
    %24 = vector.load %arg10[%c0_22, %c0_23] : memref<8x128xf32, #tpu.memory_space<vmem>>, vector<8x128xf32>
    tpu.vector_store %arg10[%c0_22, %c0_23], %23 {strides = array<i32>} : memref<8x128xf32, #tpu.memory_space<vmem>>, vector<8x128xf32>,
    return
  }
  func.func @transform_0(%arg0: i32) -> (i32, i32) {
    %c0_i32 = arith.constant 0 : i32
    %c0_i32_0 = arith.constant 0 : i32
    return %arg0, %c0_i32 : i32, i32
  }
  func.func @transform_1(%arg0: i32) -> (i32, i32) {
    %c0_i32 = arith.constant 0 : i32
    %c0_i32_0 = arith.constant 0 : i32
    return %arg0, %c0_i32 : i32, i32
  }
  func.func @transform_2(%arg0: i32) -> (i32, i32) {
    %c0_i32 = arith.constant 0 : i32
    %c0_i32_0 = arith.constant 0 : i32
    %c0_i32_1 = arith.constant 0 : i32
    return %c0_i32, %c0_i32_0 : i32, i32
  }
  func.func @transform_3(%arg0: i32) -> (i32, i32) {
    %c0_i32 = arith.constant 0 : i32
    %c0_i32_0 = arith.constant 0 : i32
    %c0_i32_1 = arith.constant 0 : i32
    return %c0_i32, %c0_i32_0 : i32, i32
  }
  func.func @transform_4(%arg0: i32) -> (i32, i32) {
    %c0_i32 = arith.constant 0 : i32
    %c0_i32_0 = arith.constant 0 : i32
    %c0_i32_1 = arith.constant 0 : i32
    return %c0_i32, %c0_i32_0 : i32, i32
  }
  func.func @transform_5(%arg0: i32) -> (i32, i32) {
    %c0_i32 = arith.constant 0 : i32
    %c0_i32_0 = arith.constant 0 : i32
    %c0_i32_1 = arith.constant 0 : i32
    return %c0_i32, %c0_i32_0 : i32, i32
  }
  func.func @transform_6(%arg0: i32) -> (i32, i32) {
    %c0_i32 = arith.constant 0 : i32
    %c0_i32_0 = arith.constant 0 : i32
    %c0_i32_1 = arith.constant 0 : i32
    return %c0_i32, %c0_i32_0 : i32, i32
  }
  func.func @transform_7(%arg0: i32) -> (i32, i32) {
    %c0_i32 = arith.constant 0 : i32
    %c0_i32_0 = arith.constant 0 : i32
    %c0_i32_1 = arith.constant 0 : i32
    return %c0_i32, %c0_i32_0 : i32, i32
  }
  func.func @transform_8(%arg0: i32) -> (i32, i32) {
    %c0_i32 = arith.constant 0 : i32
    %c0_i32_0 = arith.constant 0 : i32
    %c0_i32_1 = arith.constant 0 : i32
    return %c0_i32, %c0_i32_0 : i32, i32
  }
  func.func @transform_9(%arg0: i32) -> (i32, i32) {
    %c0_i32 = arith.constant 0 : i32
    %c0_i32_0 = arith.constant 0 : i32
    return %arg0, %c0_i32 : i32, i32
  }
}

</mosaic_0001>

<bundles_post_ra>
// kernel: tpu_custom_call.1
= control target key start
LH: loop header
LB: loop body
LE: loop exit
PB: predicated region body
PF: predicated region fallthrough
CT: control target
= control target key end

     0   :  { %14 = vsyncpa [#allocation3], 0  ;;  %s774_s0 = inlined_call_operand.vmem [shape: f32[8,28], index: 0, kind: input, shape index: {}]   ;;  %s775_s1 = inlined_call_operand.vmem [shape: f32[8,2], index: 1, kind: input, shape index: {}]   ;;  %s776_s2 = inlined_call_operand.hbm [shape: f32[28,256], index: 2, kind: input, shape index: {}]   ;;  %s777_s3 = inlined_call_operand.vmem [shape: f32[2,256], index: 3, kind: input, shape index: {}]   ;;  %s778_s4 = inlined_call_operand.vmem [shape: f32[1,256], index: 4, kind: input, shape index: {}]   ;;  %s779_s5 = inlined_call_operand.hbm [shape: f32[256,256], index: 5, kind: input, shape index: {}]   ;;  %s780_s6 = inlined_call_operand.vmem [shape: f32[1,256], index: 6, kind: input, shape index: {}]   ;;  %s781_s7 = inlined_call_operand.hbm [shape: f32[256,128], index: 7, kind: input, shape index: {}]   ;;  %s782_s8 = inlined_call_operand.vmem [shape: f32[1,128], index: 8, kind: input, shape index: {}]   ;;  %s783_s9 = inlined_call_operand.hbm [shape: f32[8,128], index: 9, kind: output, shape index: {}]  }
   0x1   :  { %15 = vsyncpa [#allocation6], 0 }
   0x2   :  { %16 = vsyncpa [#allocation4], 0  ;;  %s685_s30 = smov [#allocation5]   ;;  %s686_s11 = smov [#allocation2]  }
   0x3   :  { %s42_s10 = sshll.u32 %s685_s30, 4  ;;  %s26_s12 = sshll.u32 %s686_s11, 4  ;;  %s43_s10 = int_to_ptr.vmem [resolvable:$true] %s42_s10  ;;  %s27_s12 = int_to_ptr.vmem [resolvable:$true] %s26_s12 }
   0x4   :  { %s607_s13 = scalar_lea.vmem %s43_s10, 8192  ;;  %p612_p1 = scmp.lt.s32.totalorder %s43_s10, %s43_s10 }
   0x5   :  { %p608_p0 = scmp.ne.s32.totalorder %s43_s10, %s607_s13  ;;  %p613_p2 = scmp.lt.s32.totalorder %s607_s13, %s607_s13 }
   0x7   :  { %p614_p3 = por %p613_p2, %p612_p1 }
   0x9   :  { %p615_p4 = pnand %p614_p3, %p608_p0 }
   0xb   :  { %618 = shalt.err (!%p615_p4)
}
   0xc   :  { %s687_s14 = smov 256   ;;  %s688_s15 = smov 16  }
   0xd   :  { %48 = dma.hbm_to_vmem [thread:$0]  %s779_s5, 8192, %s43_s10, [#allocation6], %s687_s14, %s687_s14, %s688_s15  }
   0xe   :  { %s627_s18 = scalar_lea.vmem %s27_s12, 1024  ;;  %p632_p6 = scmp.lt.s32.totalorder %s27_s12, %s27_s12 }
   0xf   :  { %p628_p5 = scmp.ne.s32.totalorder %s27_s12, %s627_s18  ;;  %p633_p7 = scmp.lt.s32.totalorder %s627_s18, %s627_s18 }
  0x11   :  { %p634_p8 = por %p633_p7, %p632_p6 }
  0x13   :  { %p635_p9 = pnand %p634_p8, %p628_p5 }
  0x15   :  { %638 = shalt.err (!%p635_p9)
}
  0x16   :  { %32 = dma.hbm_to_vmem [thread:$0]  %s776_s2, 1024, %s27_s12, [#allocation3], %s687_s14, %s687_s14, %s688_s15  }
  0x17   :  { %s689_s21 = smov [#allocation7]  }
  0x18   :  { %s56_s22 = sshll.u32 %s689_s21, 4  ;;  %s57_s22 = int_to_ptr.vmem [resolvable:$true] %s56_s22 }
  0x19   :  { %s647_s23 = scalar_lea.vmem %s57_s22, 4096  ;;  %p652_p11 = scmp.lt.s32.totalorder %s57_s22, %s57_s22 }
  0x1a   :  { %p648_p10 = scmp.ne.s32.totalorder %s57_s22, %s647_s23  ;;  %p653_p12 = scmp.lt.s32.totalorder %s647_s23, %s647_s23 }
  0x1c   :  { %p654_p13 = por %p653_p12, %p652_p11 }
  0x1e   :  { %p655_p0 = pnand %p654_p13, %p648_p10 }
  0x20   :  { %658 = shalt.err (!%p655_p0)
}
  0x21   :  { %s690_s5 = smov 128   ;;  %s691_s24 = smov 8  }
  0x22   :  { %62 = dma.hbm_to_vmem [thread:$0]  %s781_s7, 4096, %s57_s22, [#allocation6], %s690_s5, %s690_s5, %s691_s24  }
  0x23   :  { %679 = dma.done.wait [#allocation3], 1024  }
  0x24   :  { %680 = vsyncadd [#allocation3], 4294966272 }
  0x25   :  { %681 = dma.done.wait [#allocation6], 12288  }
  0x26   :  { %682 = vsyncadd [#allocation6], 4294955008  ;;  %v692_v0 = vmov 0.0   ;;  %vm98_vm0 = vcmask 1041408   ;;  %v83_v3 = vld [vmem:[%s775_s1] sm:$0xff]  ;;  %vm94_vm1 = vcmask 15360  }
  0x27   :  { %167 = vmatprep.mubr.f32.mxu1 %v692_v0  ;;  %v547_v1 = vld.sshfl [vmem:[%s777_s3] sm:$0x33 pattern:$0x76325410]  ;;  %v82_v4 = vld [vmem:[#allocation2 + $0x38] sm:$0xf] }
  0x28   :  { %v93_v2 = vcombine.high %v547_v1, %v547_v1  ;;  %vm178_vm2 = vcmask 1043456   ;;  %v81_v5 = vld [vmem:[#allocation2 + $0x30] sm:$0xf]  ;;  %v303_v6 = vld [vmem:[#allocation5 + $0xf8] sm:$0xff]  ;;  %v80_v7 = vld [vmem:[#allocation2 + $0x28] sm:$0xff]  ;;  %vm174_vm3 = vcmask 228352  }
  0x29   :  { %348 = vmatprep.subr.mxu0 %v303_v6  ;;  %v302_v8 = vld [vmem:[#allocation5 + $0xf0] sm:$0xff]  ;;  %v79_v9 = vld [vmem:[#allocation2 + $0x20] sm:$0xff]  ;;  %v301_v10 = vld [vmem:[#allocation5 + $0xe8] sm:$0xff]  ;;  %s693_s12 = smov [#allocation8]  }
  0x2a   :  { %548 = vmatprep.subr.msk.mxu1 %vm98_vm0, %v93_v2  ;;  %v78_v11 = vld [vmem:[#allocation2 + $0x18] sm:$0xff]  ;;  %v300_v12 = vld [vmem:[#allocation5 + $0xe0] sm:$0xff]  ;;  %v77_v13 = vld [vmem:[#allocation2 + $0x10] sm:$0xff]  ;;  %349 = vmatpush1.msra.mxu0 %v302_v8  ;;  %s537_s13 = sshll.u32 %s693_s12, 4  ;;  %s538_s13 = int_to_ptr.vmem [resolvable:$true] %s537_s13 }
  0x2b   :  { %549 = vmatpush1.msk.msra.mxu1 %vm98_vm0, %v547_v1  ;;  %v299_v14 = vld [vmem:[#allocation5 + $0xd8] sm:$0xff]  ;;  %v76_v15 = vld [vmem:[#allocation2 + $0x8] sm:$0xff]  ;;  %350 = vmatprep.subr.mxu0 %v301_v10  ;;  %v298_v16 = vld [vmem:[#allocation5 + $0xd0] sm:$0xff]  ;;  %p664_p2 = scmp.lt.s32.totalorder %s538_s13, %s538_s13 }
  0x2c   :  { %550 = vmatmul.mubr.msk.f32.vlgmr.msra.gmra.mxu1 %vm94_vm1, %v83_v3  ;;  %551 = vmatprep.subr.msk.mxu1 %vm178_vm2, %v82_v4  ;;  %v75_v17 = vld [vmem:[#allocation2] sm:$0xff]  ;;  %v297_v18 = vld [vmem:[#allocation5 + $0xc8] sm:$0xff]  ;;  %v295_v21 = vld [vmem:[#allocation5 + $0xb8] sm:$0xff] }
  0x2d   :  { %552 = vmatpush1.msk.msra.mxu1 %vm178_vm2, %v81_v5  ;;  %249 = vmatprep.mubr.f32.mxu1 %v692_v0  ;;  %v74_v19 = vld [vmem:[%s774_s0] sm:$0xff]  ;;  %v294_v22 = vld [vmem:[#allocation5 + $0xb0] sm:$0xff]  ;;  %v293_v23 = vld [vmem:[#allocation5 + $0xa8] sm:$0xff] }
  0x2e   :  { %211 = vmatprep.subr.mxu1 %v80_v7  ;;  %351 = vmatpush1.msra.mxu0 %v300_v12  ;;  %v296_v20 = vld [vmem:[#allocation5 + $0xc0] sm:$0xff]  ;;  %v291_v25 = vld [vmem:[#allocation5 + $0x98] sm:$0xff]  ;;  %v290_v26 = vld [vmem:[#allocation5 + $0x90] sm:$0xff] }
  0x2f   :  { %212 = vmatpush1.msra.mxu1 %v79_v9  ;;  %352 = vmatprep.subr.mxu0 %v299_v14  ;;  %v292_v24 = vld [vmem:[#allocation5 + $0xa0] sm:$0xff]  ;;  %v289_v27 = vld [vmem:[#allocation5 + $0x88] sm:$0xff]  ;;  %v287_v29 = vld [vmem:[#allocation5 + $0x78] sm:$0xff] }
  0x30   :  { %213 = vmatprep.subr.mxu1 %v78_v11  ;;  %353 = vmatpush1.msra.mxu0 %v298_v16  ;;  %v288_v28 = vld [vmem:[#allocation5 + $0x80] sm:$0xff]  ;;  %v286_v30 = vld [vmem:[#allocation5 + $0x70] sm:$0xff]  ;;  %v285_v31 = vld [vmem:[#allocation5 + $0x68] sm:$0xff] }
  0x31   :  { %214 = vmatpush1.msra.mxu1 %v77_v13  ;;  %354 = vmatprep.subr.mxu0 %v297_v18  ;;  %v284_v32 = vld [vmem:[#allocation5 + $0x60] sm:$0xff]  ;;  %v283_v33 = vld [vmem:[#allocation5 + $0x58] sm:$0xff]  ;;  %v282_v34 = vld [vmem:[#allocation5 + $0x50] sm:$0xff] }
  0x32   :  { %215 = vmatprep.subr.mxu1 %v76_v15  ;;  %355 = vmatpush1.msra.mxu0 %v296_v20  ;;  %v281_v35 = vld [vmem:[#allocation5 + $0x48] sm:$0xff]  ;;  %v280_v36 = vld [vmem:[#allocation5 + $0x40] sm:$0xff]  ;;  %v279_v37 = vld [vmem:[#allocation5 + $0x38] sm:$0xff] }
  0x33   :  { %216 = vmatpush1.msra.mxu1 %v75_v17  ;;  %356 = vmatprep.subr.mxu0 %v295_v21  ;;  %v278_v38 = vld [vmem:[#allocation5 + $0x30] sm:$0xff]  ;;  %v277_v39 = vld [vmem:[#allocation5 + $0x28] sm:$0xff]  ;;  %v276_v40 = vld [vmem:[#allocation5 + $0x20] sm:$0xff] }
  0x34   :  { %553 = vmatmul.mubr.msk.f32.vlgmr.msra.gmra.mxu1 %vm174_vm3, %v74_v19  ;;  %357 = vmatpush1.msra.mxu0 %v294_v22  ;;  %v275_v41 = vld [vmem:[#allocation5 + $0x18] sm:$0xff]  ;;  %v274_v42 = vld [vmem:[#allocation5 + $0x10] sm:$0xff]  ;;  %v273_v43 = vld [vmem:[#allocation5 + $0x8] sm:$0xff] }
  0x35   :  { %358 = vmatprep.subr.mxu0 %v293_v23  ;;  %v272_v44 = vld [vmem:[#allocation5] sm:$0xff]  ;;  %v335_v45 = vld [vmem:[#allocation5 + $0x1f8] sm:$0xff]  ;;  %v334_v46 = vld [vmem:[#allocation5 + $0x1f0] sm:$0xff] }
  0x36   :  { %359 = vmatpush1.msra.mxu0 %v292_v24  ;;  %v333_v47 = vld [vmem:[#allocation5 + $0x1e8] sm:$0xff]  ;;  %v332_v48 = vld [vmem:[#allocation5 + $0x1e0] sm:$0xff]  ;;  %v331_v49 = vld [vmem:[#allocation5 + $0x1d8] sm:$0xff] }
  0x37   :  { %360 = vmatprep.subr.mxu0 %v291_v25  ;;  %v330_v50 = vld [vmem:[#allocation5 + $0x1d0] sm:$0xff]  ;;  %v329_v51 = vld [vmem:[#allocation5 + $0x1c8] sm:$0xff]  ;;  %v328_v52 = vld [vmem:[#allocation5 + $0x1c0] sm:$0xff] }
  0x38   :  { %361 = vmatpush1.msra.mxu0 %v290_v26  ;;  %v327_v53 = vld [vmem:[#allocation5 + $0x1b8] sm:$0xff]  ;;  %v326_v54 = vld [vmem:[#allocation5 + $0x1b0] sm:$0xff]  ;;  %v325_v55 = vld [vmem:[#allocation5 + $0x1a8] sm:$0xff] }
  0x39   :  { %362 = vmatprep.subr.mxu0 %v289_v27  ;;  %v324_v56 = vld [vmem:[#allocation5 + $0x1a0] sm:$0xff]  ;;  %v323_v57 = vld [vmem:[#allocation5 + $0x198] sm:$0xff]  ;;  %v322_v58 = vld [vmem:[#allocation5 + $0x190] sm:$0xff] }
  0x3a   :  { %363 = vmatpush1.msra.mxu0 %v288_v28  ;;  %v321_v59 = vld [vmem:[#allocation5 + $0x188] sm:$0xff]  ;;  %v320_v60 = vld [vmem:[#allocation5 + $0x180] sm:$0xff]  ;;  %v319_v61 = vld [vmem:[#allocation5 + $0x178] sm:$0xff] }
  0x3b   :  { %364 = vmatprep.subr.mxu0 %v287_v29  ;;  %v318_v62 = vld [vmem:[#allocation5 + $0x170] sm:$0xff]  ;;  %v317_v63 = vld [vmem:[#allocation5 + $0x168] sm:$0xff]  ;;  %v316_v0 = vld [vmem:[#allocation5 + $0x160] sm:$0xff] }
  0x3c   :  { %365 = vmatpush1.msra.mxu0 %v286_v30  ;;  %v315_v1 = vld [vmem:[#allocation5 + $0x158] sm:$0xff]  ;;  %v314_v2 = vld [vmem:[#allocation5 + $0x150] sm:$0xff]  ;;  %v313_v3 = vld [vmem:[#allocation5 + $0x148] sm:$0xff] }
  0x3d   :  { %366 = vmatprep.subr.mxu0 %v285_v31  ;;  %v312_v4 = vld [vmem:[#allocation5 + $0x140] sm:$0xff]  ;;  %v311_v5 = vld [vmem:[#allocation5 + $0x138] sm:$0xff]  ;;  %v310_v6 = vld [vmem:[#allocation5 + $0x130] sm:$0xff] }
  0x3e   :  { %367 = vmatpush1.msra.mxu0 %v284_v32  ;;  %v309_v7 = vld [vmem:[#allocation5 + $0x128] sm:$0xff]  ;;  %v308_v8 = vld [vmem:[#allocation5 + $0x120] sm:$0xff]  ;;  %v307_v9 = vld [vmem:[#allocation5 + $0x118] sm:$0xff] }
  0x3f   :  { %368 = vmatprep.subr.mxu0 %v283_v33  ;;  %v306_v10 = vld [vmem:[#allocation5 + $0x110] sm:$0xff]  ;;  %v305_v11 = vld [vmem:[#allocation5 + $0x108] sm:$0xff]  ;;  %v304_v12 = vld [vmem:[#allocation5 + $0x100] sm:$0xff] }
  0x40   :  { %369 = vmatpush1.msra.mxu0 %v282_v34  ;;  %v452_v13 = vld [vmem:[#allocation7 + $0xf8] sm:$0xff]  ;;  %v451_v15 = vld [vmem:[#allocation7 + $0xf0] sm:$0xff]  ;;  %v450_v17 = vld [vmem:[#allocation7 + $0xe8] sm:$0xff] }
  0x41   :  { %370 = vmatprep.subr.mxu0 %v281_v35  ;;  %v436_v14 = vld [vmem:[#allocation7 + $0x78] sm:$0xff]  ;;  %555 = vmatprep.subr.mxu1 %v452_v13  ;;  %v435_v16 = vld [vmem:[#allocation7 + $0x70] sm:$0xff]  ;;  %v434_v18 = vld [vmem:[#allocation7 + $0x68] sm:$0xff] }
  0x42   :  { %371 = vmatpush1.msra.mxu0 %v280_v36  ;;  %556 = vmatpush3.msra.mxu1 %v436_v14  ;;  %v449_v19 = vld [vmem:[#allocation7 + $0xe0] sm:$0xff]  ;;  %v448_v21 = vld [vmem:[#allocation7 + $0xd8] sm:$0xff]  ;;  %v447_v23 = vld [vmem:[#allocation7 + $0xd0] sm:$0xff] }
  0x43   :  { %372 = vmatprep.subr.mxu0 %v279_v37  ;;  %557 = vmatprep.subr.mxu1 %v451_v15  ;;  %v433_v20 = vld [vmem:[#allocation7 + $0x60] sm:$0xff]  ;;  %v432_v22 = vld [vmem:[#allocation7 + $0x58] sm:$0xff]  ;;  %v431_v24 = vld [vmem:[#allocation7 + $0x50] sm:$0xff]  ;;  %v258_v37 = vlaneseq }
  0x44   :  { %373 = vmatpush1.msra.mxu0 %v278_v38  ;;  %558 = vmatpush3.msra.mxu1 %v435_v16  ;;  %v446_v25 = vld [vmem:[#allocation7 + $0xc8] sm:$0xff]  ;;  %v445_v27 = vld [vmem:[#allocation7 + $0xc0] sm:$0xff]  ;;  %v444_v29 = vld [vmem:[#allocation7 + $0xb8] sm:$0xff] }
  0x45   :  { %374 = vmatprep.subr.mxu0 %v277_v39  ;;  %559 = vmatprep.subr.mxu1 %v450_v17  ;;  %v430_v26 = vld [vmem:[#allocation7 + $0x48] sm:$0xff]  ;;  %v429_v28 = vld [vmem:[#allocation7 + $0x40] sm:$0xff]  ;;  %v428_v30 = vld [vmem:[#allocation7 + $0x38] sm:$0xff]  ;;  %v259_v38 = vshrl.u32 %v258_v37, 7 }
  0x46   :  { %375 = vmatpush1.msra.mxu0 %v276_v40  ;;  %560 = vmatpush3.msra.mxu1 %v434_v18  ;;  %v443_v31 = vld [vmem:[#allocation7 + $0xb0] sm:$0xff]  ;;  %v442_v33 = vld [vmem:[#allocation7 + $0xa8] sm:$0xff]  ;;  %v441_v35 = vld [vmem:[#allocation7 + $0xa0] sm:$0xff] }
  0x47   :  { %376 = vmatprep.subr.mxu0 %v275_v41  ;;  %561 = vmatprep.subr.mxu1 %v449_v19  ;;  %v427_v32 = vld [vmem:[#allocation7 + $0x30] sm:$0xff]  ;;  %v426_v34 = vld [vmem:[#allocation7 + $0x28] sm:$0xff]  ;;  %v425_v36 = vld [vmem:[#allocation7 + $0x20] sm:$0xff]  ;;  %v260_v40 = vsub.s32 0, %v259_v38 }
  0x48   :  { %377 = vmatpush1.msra.mxu0 %v274_v42  ;;  %562 = vmatpush3.msra.mxu1 %v433_v20  ;;  %v256_v41 = vld [vmem:[%s778_s4] sm:$0x3]  ;;  %v264_v42 = vsub.s32 1, %v259_v38 }
  0x49   :  { %378 = vmatprep.subr.mxu0 %v273_v43  ;;  %563 = vmatprep.subr.mxu1 %v448_v21 }
  0x4a   :  { %379 = vmatpush1.msra.mxu0 %v272_v44  ;;  %564 = vmatpush3.msra.mxu1 %v432_v22 }
  0x4b   :  { %380 = vmatprep.subr.mxu0 %v335_v45  ;;  %565 = vmatprep.subr.mxu1 %v447_v23  ;;  %v261_v45 = vrot.slane %v256_v41, %v260_v40 }
  0x4c   :  { %381 = vmatpush2.msra.mxu0 %v334_v46  ;;  %566 = vmatpush3.msra.mxu1 %v431_v24 }
  0x4d   :  { %382 = vmatprep.subr.mxu0 %v333_v47  ;;  %567 = vmatprep.subr.mxu1 %v446_v25  ;;  %v265_v47 = vrot.slane %v256_v41, %v264_v42 }
  0x4e   :  { %383 = vmatpush2.msra.mxu0 %v332_v48  ;;  %568 = vmatpush3.msra.mxu1 %v430_v26 }
  0x4f   :  { %384 = vmatprep.subr.mxu0 %v331_v49  ;;  %569 = vmatprep.subr.mxu1 %v445_v27 }
  0x50   :  { %385 = vmatpush2.msra.mxu0 %v330_v50  ;;  %570 = vmatpush3.msra.mxu1 %v429_v28 }
  0x51   :  { %386 = vmatprep.subr.mxu0 %v329_v51  ;;  %571 = vmatprep.subr.mxu1 %v444_v29 }
  0x52   :  { %387 = vmatpush2.msra.mxu0 %v328_v52  ;;  %572 = vmatpush3.msra.mxu1 %v428_v30 }
  0x53   :  { %388 = vmatprep.subr.mxu0 %v327_v53  ;;  %573 = vmatprep.subr.mxu1 %v443_v31 }
  0x54   :  { %389 = vmatpush2.msra.mxu0 %v326_v54  ;;  %574 = vmatpush3.msra.mxu1 %v427_v32  ;;  %v440_v54 = vld [vmem:[#allocation7 + $0x98] sm:$0xff] }
  0x55   :  { %390 = vmatprep.subr.mxu0 %v325_v55  ;;  %575 = vmatprep.subr.mxu1 %v442_v33  ;;  %v424_v55 = vld [vmem:[#allocation7 + $0x18] sm:$0xff] }
  0x56   :  { %391 = vmatpush2.msra.mxu0 %v324_v56  ;;  %576 = vmatpush3.msra.mxu1 %v426_v34  ;;  %v439_v56 = vld [vmem:[#allocation7 + $0x90] sm:$0xff] }
  0x57   :  { %392 = vmatprep.subr.mxu0 %v323_v57  ;;  %577 = vmatprep.subr.mxu1 %v441_v35  ;;  %v423_v57 = vld [vmem:[#allocation7 + $0x10] sm:$0xff] }
  0x58   :  { %393 = vmatpush2.msra.mxu0 %v322_v58  ;;  %578 = vmatpush3.msra.mxu1 %v425_v36  ;;  %v438_v58 = vld [vmem:[#allocation7 + $0x88] sm:$0xff] }
  0x59   :  { %394 = vmatprep.subr.mxu0 %v321_v59  ;;  %579 = vmatprep.subr.mxu1 %v440_v54  ;;  %v422_v59 = vld [vmem:[#allocation7 + $0x8] sm:$0xff] }
  0x5a   :  { %395 = vmatpush2.msra.mxu0 %v320_v60  ;;  %580 = vmatpush3.msra.mxu1 %v424_v55  ;;  %v437_v60 = vld [vmem:[#allocation7 + $0x80] sm:$0xff] }
  0x5b   :  { %396 = vmatprep.subr.mxu0 %v319_v61  ;;  %581 = vmatprep.subr.mxu1 %v439_v56  ;;  %v421_v61 = vld [vmem:[#allocation7] sm:$0xff] }
  0x5c   :  { %397 = vmatpush2.msra.mxu0 %v318_v62  ;;  %582 = vmatpush3.msra.mxu1 %v423_v57  ;;  %v336_v62 = vld [vmem:[%s780_s6] sm:$0x3]  ;;  %s659_s6 = scalar_lea.vmem %s538_s13, 128 }
  0x5d   :  { %398 = vmatprep.subr.mxu0 %v317_v63  ;;  %583 = vmatprep.subr.mxu1 %v438_v58  ;;  %v341_v63 = vrot.slane %v336_v62, %v260_v40  ;;  %p660_p1 = scmp.ne.s32.totalorder %s538_s13, %s659_s6  ;;  %p665_p3 = scmp.lt.s32.totalorder %s659_s6, %s659_s6 }
  0x5e   :  { %399 = vmatpush2.msra.mxu0 %v316_v0  ;;  %584 = vmatpush3.msra.mxu1 %v422_v59  ;;  %v345_v0 = vrot.slane %v336_v62, %v264_v42 }
  0x5f   :  { %400 = vmatprep.subr.mxu0 %v315_v1  ;;  %585 = vmatprep.subr.mxu1 %v437_v60  ;;  %p666_p4 = por %p665_p3, %p664_p2 }
  0x60   :  { %401 = vmatpush2.msra.mxu0 %v314_v2  ;;  %586 = vmatpush3.msra.mxu1 %v421_v61 }
  0x61   :  { %402 = vmatprep.subr.mxu0 %v313_v3  ;;  %p667_p5 = pnand %p666_p4, %p660_p1 }
  0x62   :  { %403 = vmatpush2.msra.mxu0 %v312_v4 }
  0x63   :  { %404 = vmatprep.subr.mxu0 %v311_v5 }
  0x64   :  { %405 = vmatpush2.msra.mxu0 %v310_v6 }
  0x65   :  { %406 = vmatprep.subr.mxu0 %v309_v7 }
  0x66   :  { %407 = vmatpush2.msra.mxu0 %v308_v8  ;;  %v554_v8 = vld [vmem:[%s782_s8] ss:$0 sm:$0xff] }
  0x67   :  { %408 = vmatprep.subr.mxu0 %v307_v9 }
  0x68   :  { %409 = vmatpush2.msra.mxu0 %v306_v10 }
  0x69   :  { %410 = vmatprep.subr.mxu0 %v305_v11 }
  0x6a   :  { %411 = vmatpush2.msra.mxu0 %v304_v12 }
  0xec   :  { %v169_v39 = vpop.f32.mrf.mxu1 }
  0xee   :  { %v171_v43 = vpop.f32.mrf.mxu1 }
  0xf4   :  { %v251_v44 = vpop.f32.mrf.mxu1 }
  0xf5   :  { %v252_v46 = vadd.f32 %v251_v44, %v169_v39 }
  0xf6   :  { %v253_v48 = vpop.f32.mrf.mxu1 }
  0xf7   :  { %v254_v49 = vadd.f32 %v253_v48, %v171_v43  ;;  %v268_v50 = vadd.f32 %v261_v45, %v252_v46 }
  0xf9   :  { %v269_v51 = vadd.f32 %v265_v47, %v254_v49  ;;  %v270_v53 = vmax.f32 %v268_v50, 0.0 }
  0xfb   :  { %v271_v52 = vmax.f32 %v269_v51, 0.0 }
  0xfd   :  { %412 = vmatprep.mubr.f32.mxu0 %v271_v52 }
  0xfe   :  { %413 = vmatmul.mubr.f32.vlgmr.msra.gmra.mxu0 %v270_v53 }
 0x1be   :  { %v414_v1 = vpop.f32.mrf.mxu0 }
 0x1bf   :  { %v415_v2 = vadd.f32 %v414_v1, %v341_v63 }
 0x1c0   :  { %v416_v3 = vpop.f32.mrf.mxu0 }
 0x1c1   :  { %v417_v4 = vadd.f32 %v416_v3, %v345_v0  ;;  %v419_v6 = vmax.f32 %v415_v2, 0.0 }
 0x1c3   :  { %v420_v5 = vmax.f32 %v417_v4, 0.0 }
 0x1c5   :  { %524 = vmatprep.mubr.f32.mxu1 %v420_v5 }
 0x1c6   :  { %525 = vmatmul.mubr.f32.vlgmr.msra.gmra.mxu1 %v419_v6 }
 0x286   :  { %v587_v7 = vpop.f32.mrf.mxu1 }
 0x288   :  { %v588_v9 = vpop.f32.mrf.mxu1 }
 0x289   :  { %v589_v10 = vadd.f32 %v588_v9, %v587_v7 }
 0x28b   :  { %v527_v11 = vadd.f32 %v589_v10, %v554_v8 }
 0x28d   :  { %530 = vst [vmem:[#allocation8] sm:$0xff] %v527_v11 }
 0x28e   :  { %670 = shalt.err (!%p667_p5)
}
 0x28f   :  { %540 = dma.vmem_to_hbm [thread:$0]  %s538_s13, 128, %s783_s9, [#allocation4]  }
 0x290   :  { %683 = dma.done.wait [#allocation4], 128  }
 0x291   :  { %684 = vsyncadd [#allocation4], 4294967168 }
 0x292   :  { %544 = vsyncpa [#allocation3], 1 }
 0x293   :  { %545 = vsyncpa [#allocation6], 1 }
 0x294   :  { %546 = vsyncpa [#allocation4], 1 }

</bundles_post_ra>
